<compile_context>
chip_gen: v7x
topology: tpu7x:2x2x1
jax: 0.10.0
libtpu: 0.0.40
codegen_flags: <defaults>
</compile_context>

<pallas_src>
import math

import jax
import jax.numpy as jnp
from jax.experimental import pallas as pl
from jax.experimental.pallas import tpu as pltpu

# ----- model dims (small, consistent with the module) -----
BATCH = 2
SEQ = 8
EMBED = 32
HIDDEN = 64               # feed-forward hidden dim (2x embed)
NUM_HEADS = 4
HEAD = EMBED // NUM_HEADS  # 8
BS = BATCH * SEQ           # 16 rows per instance
STACK = NUM_HEADS * BS     # 64 rows when heads are stacked along sublanes
QKV_COLS = 2 * HEAD + EMBED  # 48: [Q_h | K_h | V block-diagonal]
LN_EPS = 1e-5

_INV_SQRT_HEAD = 1.0 / math.sqrt(HEAD)
_INV_SQRT2 = 1.0 / math.sqrt(2.0)

# ----- packed parameter slab layout (rows x 128 lanes, f32) -----
_C_PACK = QKV_COLS                 # lane offset 48 for params sharing the W_stack rows
_R_WSTACK = 0                      # rows [0,128)  cols [0,48)   : head-stacked W_qkv
_R_W1 = 0                          # rows [0,32)   cols [48,112) : W1 (E,H)
_R_W2 = EMBED                      # rows [32,96)  cols [48,80)  : W2 (H,E)
_R_WO = EMBED + HIDDEN             # rows [96,128) cols [48,80)  : Wo (E,E)
_R_BM = NUM_HEADS * EMBED          # rows [128,192): cols [0,48) bias_stack, cols [48,112) mask
ROW_BO = _R_BM + STACK             # 192, cols [0,32)
ROW_G1 = ROW_BO + 1
ROW_BE1 = ROW_BO + 2
ROW_B1 = ROW_BO + 3                # cols [0,64)
ROW_B2 = ROW_BO + 4
ROW_G2 = ROW_BO + 5
ROW_BE2 = ROW_BO + 6
SLAB_ROWS = 200                    # 199 used, padded to a multiple of 8
SLAB_COLS = 128


def _layer_norm(x, gamma, beta, eps=LN_EPS):
    # torch.var(..., unbiased=False) == mean of squared deviations
    mean = jnp.mean(x, axis=-1, keepdims=True)
    var = jnp.mean((x - mean) ** 2, axis=-1, keepdims=True)
    return (x - mean) * jax.lax.rsqrt(var + eps) * gamma + beta


def _post_norm_attn_kernel(x_ref, w_ref, o_ref):
    f32 = jnp.float32
    x = x_ref[0].astype(f32)                                    # (BS, E)

    # ---- block-diagonal replication of x: row-block h carries x at lane offset h*E ----
    z = jnp.zeros_like(x)
    row_blocks = []
    for h in range(NUM_HEADS):
        parts = [z] * NUM_HEADS
        parts[h] = x
        row_blocks.append(jnp.concatenate(parts, axis=1))       # (BS, 4E) = (16,128)
    x_bd = jnp.concatenate(row_blocks, axis=0)                   # (STACK, 4E) = (64,128)

    # ---- ONE stacked QKV projection for all 4 heads (single MXU push) ----
    w_stack = w_ref[_R_WSTACK:_R_WSTACK + NUM_HEADS * EMBED, 0:QKV_COLS]   # (128, 48)
    b_stack = w_ref[_R_BM:_R_BM + STACK, 0:QKV_COLS]                        # (64, 48)
    qkv = jnp.dot(x_bd, w_stack, preferred_element_type=f32) + b_stack      # (64, 48)

    q_s = qkv[:, 0:HEAD]                       # (64, 8)  heads stacked along sublanes
    k_s = qkv[:, HEAD:2 * HEAD]                # (64, 8)
    v_bd = qkv[:, 2 * HEAD:QKV_COLS]           # (64, 32) block-diagonal per head

    # ---- host-precomputed additive mask: 0 within a (head,batch) group, -1e9 elsewhere ----
    neg_mask = w_ref[_R_BM:_R_BM + STACK, _C_PACK:_C_PACK + STACK]          # (64, 64)

    # ---- single-shot attention for all heads / all batches ----
    s = jnp.dot(q_s, k_s.T, preferred_element_type=f32) * _INV_SQRT_HEAD + neg_mask
    s = s - jnp.max(s, axis=-1, keepdims=True)
    p = jnp.exp(s)                                              # masked entries -> exactly 0
    p = p * pl.reciprocal(jnp.sum(p, axis=-1, keepdims=True))   # exact 1/x

    # row-block h of ctx_bd holds head-h context at lanes [h*HEAD,(h+1)*HEAD), zeros elsewhere;
    # "merge_heads" is therefore a plain sum of the 4 sublane blocks.
    ctx_bd = jnp.dot(p, v_bd, preferred_element_type=f32)       # (64, 32)
    ctx = ctx_bd[0:BS]
    for h in range(1, NUM_HEADS):
        ctx = ctx + ctx_bd[h * BS:(h + 1) * BS]                 # (16, 32) merged heads

    wo = w_ref[_R_WO:_R_WO + EMBED, _C_PACK:_C_PACK + EMBED]
    bo = w_ref[ROW_BO:ROW_BO + 1, 0:EMBED]
    attn = jnp.dot(ctx, wo, preferred_element_type=f32) + bo

    # ---- residual + LayerNorm 1 ----
    g1 = w_ref[ROW_G1:ROW_G1 + 1, 0:EMBED]
    be1 = w_ref[ROW_BE1:ROW_BE1 + 1, 0:EMBED]
    h1 = _layer_norm(x + attn, g1, be1)

    # ---- MLP: Linear -> GELU(exact erf) -> Linear (dropout = identity) ----
    w1 = w_ref[_R_W1:_R_W1 + EMBED, _C_PACK:_C_PACK + HIDDEN]
    b1 = w_ref[ROW_B1:ROW_B1 + 1, 0:HIDDEN]
    t = jnp.dot(h1, w1, preferred_element_type=f32) + b1
    t = 0.5 * t * (1.0 + jax.lax.erf(t * _INV_SQRT2))
    w2 = w_ref[_R_W2:_R_W2 + HIDDEN, _C_PACK:_C_PACK + EMBED]
    b2 = w_ref[ROW_B2:ROW_B2 + 1, 0:EMBED]
    t = jnp.dot(t, w2, preferred_element_type=f32) + b2

    # ---- residual + LayerNorm 2 ----
    g2 = w_ref[ROW_G2:ROW_G2 + 1, 0:EMBED]
    be2 = w_ref[ROW_BE2:ROW_BE2 + 1, 0:EMBED]
    out = _layer_norm(t + h1, g2, be2)
    o_ref[0] = out.astype(o_ref.dtype)


def pack_params(p):
    """Pack weights/biases/LN params + attention mask into one (SLAB_ROWS, 128) f32 slab."""
    wq, wk, wv = p["wq"], p["wk"], p["wv"]
    bq, bk, bv = p["bq"][0], p["bk"][0], p["bv"][0]

    w_stack = jnp.zeros((NUM_HEADS * EMBED, QKV_COLS), jnp.float32)
    b_stack = jnp.zeros((STACK, QKV_COLS), jnp.float32)
    for h in range(NUM_HEADS):
        hc = slice(h * HEAD, (h + 1) * HEAD)
        wr = slice(h * EMBED, (h + 1) * EMBED)
        br = slice(h * BS, (h + 1) * BS)
        vc = slice(2 * HEAD + h * HEAD, 2 * HEAD + (h + 1) * HEAD)
        w_stack = w_stack.at[wr, 0:HEAD].set(wq[:, hc])
        w_stack = w_stack.at[wr, HEAD:2 * HEAD].set(wk[:, hc])
        w_stack = w_stack.at[wr, vc].set(wv[:, hc])
        b_stack = b_stack.at[br, 0:HEAD].set(jnp.broadcast_to(bq[hc], (BS, HEAD)))
        b_stack = b_stack.at[br, HEAD:2 * HEAD].set(jnp.broadcast_to(bk[hc], (BS, HEAD)))
        b_stack = b_stack.at[br, vc].set(jnp.broadcast_to(bv[hc], (BS, HEAD)))

    # rows/cols are indexed by (head, batch, seq); attention only within the same (head, batch)
    grp = jnp.arange(STACK) // SEQ
    neg_mask = jnp.where(grp[:, None] == grp[None, :], 0.0, -1e9).astype(jnp.float32)

    slab = jnp.zeros((SLAB_ROWS, SLAB_COLS), jnp.float32)
    slab = slab.at[_R_WSTACK:_R_WSTACK + NUM_HEADS * EMBED, 0:QKV_COLS].set(w_stack)
    slab = slab.at[_R_W1:_R_W1 + EMBED, _C_PACK:_C_PACK + HIDDEN].set(p["w1"])
    slab = slab.at[_R_W2:_R_W2 + HIDDEN, _C_PACK:_C_PACK + EMBED].set(p["w2"])
    slab = slab.at[_R_WO:_R_WO + EMBED, _C_PACK:_C_PACK + EMBED].set(p["wo"])
    slab = slab.at[_R_BM:_R_BM + STACK, 0:QKV_COLS].set(b_stack)
    slab = slab.at[_R_BM:_R_BM + STACK, _C_PACK:_C_PACK + STACK].set(neg_mask)
    slab = slab.at[ROW_BO, 0:EMBED].set(p["bo"][0])
    slab = slab.at[ROW_G1, 0:EMBED].set(p["g1"][0])
    slab = slab.at[ROW_BE1, 0:EMBED].set(p["be1"][0])
    slab = slab.at[ROW_B1, 0:HIDDEN].set(p["b1"][0])
    slab = slab.at[ROW_B2, 0:EMBED].set(p["b2"][0])
    slab = slab.at[ROW_G2, 0:EMBED].set(p["g2"][0])
    slab = slab.at[ROW_BE2, 0:EMBED].set(p["be2"][0])
    return slab


@jax.jit
def _call_batched(x, slab):
    """x: (N, BATCH, SEQ, EMBED) — N independent block instances, one pallas_call."""
    N = x.shape[0]
    assert x.shape[1:] == (BATCH, SEQ, EMBED)
    x2 = x.reshape(N, BS, EMBED)
    flops = 2 * N * (STACK * (NUM_HEADS * EMBED) * QKV_COLS      # stacked QKV proj
                     + STACK * HEAD * STACK                      # Q @ K^T
                     + STACK * STACK * EMBED                     # P @ V
                     + BS * EMBED * EMBED                        # Wo
                     + BS * EMBED * HIDDEN + BS * HIDDEN * EMBED)  # MLP
    out = pl.pallas_call(
        _post_norm_attn_kernel,
        grid=(N,),
        in_specs=[pl.BlockSpec((1, BS, EMBED), lambda n: (n, 0, 0)),
                  pl.BlockSpec((SLAB_ROWS, SLAB_COLS), lambda n: (0, 0))],
        out_specs=pl.BlockSpec((1, BS, EMBED), lambda n: (n, 0, 0)),
        out_shape=jax.ShapeDtypeStruct((N, BS, EMBED), x.dtype),
        compiler_params=pltpu.CompilerParams(dimension_semantics=("parallel",)),
        cost_estimate=pl.CostEstimate(
            flops=flops,
            transcendentals=N * (STACK * STACK + BS * HIDDEN),
            bytes_accessed=4 * (2 * N * BS * EMBED + SLAB_ROWS * SLAB_COLS)),
    )(x2, slab)
    return out.reshape(N, BATCH, SEQ, EMBED)


def post_norm_attention_block(x, slab):
    """x: (BATCH, SEQ, EMBED) for one instance, or (N, BATCH, SEQ, EMBED) for N instances."""
    if x.ndim == 3:
        return _call_batched(x[None], slab)[0]
    return _call_batched(x, slab)


# ---------- pure-JAX reference for a sanity check ----------
def reference_forward(x, p):
    def ln(t, g, b):
        m = jnp.mean(t, axis=-1, keepdims=True)
        v = jnp.mean((t - m) ** 2, axis=-1, keepdims=True)
        return (t - m) / jnp.sqrt(v + LN_EPS) * g + b

    B, S, E = x.shape
    q = x @ p["wq"] + p["bq"]
    k = x @ p["wk"] + p["bk"]
    v = x @ p["wv"] + p["bv"]

    def split(t):
        return t.reshape(B, S, NUM_HEADS, HEAD).transpose(0, 2, 1, 3)

    qh, kh, vh = split(q), split(k), split(v)
    s = jnp.einsum("bhqd,bhkd->bhqk", qh, kh) / math.sqrt(HEAD)
    w = jax.nn.softmax(s, axis=-1)
    ctx = jnp.einsum("bhqk,bhkd->bhqd", w, vh)
    ctx = ctx.transpose(0, 2, 1, 3).reshape(B, S, E)
    attn = ctx @ p["wo"] + p["bo"]
    h1 = ln(x + attn, p["g1"], p["be1"])
    z = h1 @ p["w1"] + p["b1"]
    z = 0.5 * z * (1.0 + jax.lax.erf(z / math.sqrt(2.0)))
    z = z @ p["w2"] + p["b2"]
    return ln(z + h1, p["g2"], p["be2"])


def init_params(key):
    ks = jax.random.split(key, 6)
    scale = 0.05
    return {
        "wq": jax.random.normal(ks[0], (EMBED, EMBED), jnp.float32) * scale,
        "wk": jax.random.normal(ks[1], (EMBED, EMBED), jnp.float32) * scale,
        "wv": jax.random.normal(ks[2], (EMBED, EMBED), jnp.float32) * scale,
        "wo": jax.random.normal(ks[3], (EMBED, EMBED), jnp.float32) * scale,
        "bq": jnp.full((1, EMBED), 0.01, jnp.float32),
        "bk": jnp.full((1, EMBED), -0.01, jnp.float32),
        "bv": jnp.full((1, EMBED), 0.02, jnp.float32),
        "bo": jnp.zeros((1, EMBED), jnp.float32),
        "g1": jnp.ones((1, EMBED), jnp.float32),
        "be1": jnp.zeros((1, EMBED), jnp.float32),
        "w1": jax.random.normal(ks[4], (EMBED, HIDDEN), jnp.float32) * scale,
        "b1": jnp.full((1, HIDDEN), 0.01, jnp.float32),
        "w2": jax.random.normal(ks[5], (HIDDEN, EMBED), jnp.float32) * scale,
        "b2": jnp.zeros((1, EMBED), jnp.float32),
        "g2": jnp.ones((1, EMBED), jnp.float32),
        "be2": jnp.zeros((1, EMBED), jnp.float32),
    }


if __name__ == "__main__":
    key = jax.random.PRNGKey(0)
    k_x, k_p = jax.random.split(key)
    x = jax.random.normal(k_x, (BATCH, SEQ, EMBED), jnp.float32)
    params = init_params(k_p)
    slab = pack_params(params)

    # single instance (matches the PyTorch module call)
    out = post_norm_attention_block(x, slab)
    out = jax.block_until_ready(out)
    ref = reference_forward(x, params)
    assert out.shape == (BATCH, SEQ, EMBED)
    assert jnp.allclose(out, ref, atol=1e-4, rtol=1e-4), "mismatch vs reference (single)"

    # batched instances: one pallas_call over a "parallel" grid axis (amortizes dispatch,
    # uses both TensorCores on v7x); same per-instance semantics.
    xs = jax.random.normal(jax.random.PRNGKey(1), (3, BATCH, SEQ, EMBED), jnp.float32)
    outs = jax.block_until_ready(post_norm_attention_block(xs, slab))
    refs = jax.vmap(lambda xi: reference_forward(xi, params))(xs)
    assert jnp.allclose(outs, refs, atol=1e-4, rtol=1e-4), "mismatch vs reference (batched)"

    print("KERNEL_OK")
</pallas_src>

<mosaic_0001>
module attributes {stable_mosaic.version = 11 : i64} {
  func.func @_post_norm_attn_kernel(%arg0: i32, %arg1: memref<1x16x32xf32, #tpu.memory_space<vmem>>, %arg2: memref<200x128xf32, #tpu.memory_space<vmem>>, %arg3: memref<1x16x32xf32, #tpu.memory_space<vmem>>) attributes {dimension_semantics = [#tpu.dimension_semantics<parallel>], iteration_bounds = array<i64: 1>, scalar_prefetch = 0 : i64, scratch_operands = 0 : i64, tpu.core_type = #tpu.core_type<tc>, window_params = [{transform_indices = @transform_0, window_bounds = array<i64: 1, 16, 32>}, {pipeline_mode = #tpu.pipeline_mode<synchronous>, transform_indices = @transform_1, window_bounds = array<i64: 200, 128>}, {transform_indices = @transform_2, window_bounds = array<i64: 1, 16, 32>}]} {
    %c0 = arith.constant 0 : index
    %c0_0 = arith.constant 0 : index
    %c0_1 = arith.constant 0 : index
    %0 = vector.load %arg1[%c0, %c0_0, %c0_1] : memref<1x16x32xf32, #tpu.memory_space<vmem>>, vector<1x16x32xf32>
    %1 = vector.shape_cast %0 : vector<1x16x32xf32> to vector<16x32xf32>
    %cst = arith.constant 0.000000e+00 : f32
    %2 = vector.broadcast %cst : f32 to vector<16x32xf32>
    %3 = tpu.concatenate %1, %2, %2, %2 in 1 : vector<16x32xf32>, vector<16x32xf32>, vector<16x32xf32>, vector<16x32xf32> -> vector<16x128xf32>
    %4 = tpu.concatenate %2, %1, %2, %2 in 1 : vector<16x32xf32>, vector<16x32xf32>, vector<16x32xf32>, vector<16x32xf32> -> vector<16x128xf32>
    %5 = tpu.concatenate %2, %2, %1, %2 in 1 : vector<16x32xf32>, vector<16x32xf32>, vector<16x32xf32>, vector<16x32xf32> -> vector<16x128xf32>
    %6 = tpu.concatenate %2, %2, %2, %1 in 1 : vector<16x32xf32>, vector<16x32xf32>, vector<16x32xf32>, vector<16x32xf32> -> vector<16x128xf32>
    %7 = tpu.concatenate %3, %4, %5, %6 in 0 : vector<16x128xf32>, vector<16x128xf32>, vector<16x128xf32>, vector<16x128xf32> -> vector<64x128xf32>
    %c0_2 = arith.constant 0 : index
    %c0_3 = arith.constant 0 : index
    %8 = vector.load %arg2[%c0_2, %c0_3] : memref<200x128xf32, #tpu.memory_space<vmem>>, vector<128x48xf32>
    %c128 = arith.constant 128 : index
    %c0_4 = arith.constant 0 : index
    %9 = vector.load %arg2[%c128, %c0_4] : memref<200x128xf32, #tpu.memory_space<vmem>>, vector<64x48xf32>
    %cst_5 = arith.constant dense<0.000000e+00> : vector<64x48xf32>
    %10 = tpu.matmul %7, %8, %cst_5 {dimension_numbers = #tpu.dot_dimension_numbers<[1], [0], [0], [1], [0, 0, 1, 1], [], []>} : vector<64x128xf32>, vector<128x48xf32>, vector<64x48xf32> -> vector<64x48xf32>
    %11 = arith.addf %10, %9 : vector<64x48xf32>
    %12 = vector.extract_strided_slice %11 {offsets = [0, 0], sizes = [64, 8], strides = [1, 1]} : vector<64x48xf32> to vector<64x8xf32>
    %13 = vector.extract_strided_slice %11 {offsets = [0, 8], sizes = [64, 8], strides = [1, 1]} : vector<64x48xf32> to vector<64x8xf32>
    %14 = vector.extract_strided_slice %11 {offsets = [0, 16], sizes = [64, 32], strides = [1, 1]} : vector<64x48xf32> to vector<64x32xf32>
    %c128_6 = arith.constant 128 : index
    %c48 = arith.constant 48 : index
    %15 = vector.load %arg2[%c128_6, %c48] : memref<200x128xf32, #tpu.memory_space<vmem>>, vector<64x64xf32>
    %16 = tpu.transpose %13, [1, 0] : vector<64x8xf32> -> vector<8x64xf32>
    %cst_7 = arith.constant dense<0.000000e+00> : vector<64x64xf32>
    %17 = tpu.matmul %12, %16, %cst_7 {dimension_numbers = #tpu.dot_dimension_numbers<[1], [0], [0], [1], [0, 0, 1, 1], [], []>} : vector<64x8xf32>, vector<8x64xf32>, vector<64x64xf32> -> vector<64x64xf32>
    %cst_8 = arith.constant 0.353553385 : f32
    %18 = vector.broadcast %cst_8 : f32 to vector<64x64xf32>
    %19 = arith.mulf %17, %18 : vector<64x64xf32>
    %20 = arith.addf %19, %15 : vector<64x64xf32>
    %cst_9 = arith.constant dense<0xFF800000> : vector<64xf32>
    %21 = vector.multi_reduction <maximumf>, %20, %cst_9 [1] : vector<64x64xf32> to vector<64xf32>
    %22 = vector.shape_cast %21 : vector<64xf32> to vector<64x1xf32>
    %23 = vector.broadcast %22 : vector<64x1xf32> to vector<64x64xf32>
    %24 = arith.subf %20, %23 : vector<64x64xf32>
    %25 = math.exp %24 : vector<64x64xf32>
    %cst_10 = arith.constant dense<0.000000e+00> : vector<64xf32>
    %26 = vector.multi_reduction <add>, %25, %cst_10 [1] : vector<64x64xf32> to vector<64xf32>
    %27 = vector.shape_cast %26 : vector<64xf32> to vector<64x1xf32>
    %28 = tpu.reciprocal %27 : vector<64x1xf32> -> vector<64x1xf32>
    %29 = vector.broadcast %28 : vector<64x1xf32> to vector<64x64xf32>
    %30 = arith.mulf %25, %29 : vector<64x64xf32>
    %cst_11 = arith.constant dense<0.000000e+00> : vector<64x32xf32>
    %31 = tpu.matmul %30, %14, %cst_11 {dimension_numbers = #tpu.dot_dimension_numbers<[1], [0], [0], [1], [0, 0, 1, 1], [], []>} : vector<64x64xf32>, vector<64x32xf32>, vector<64x32xf32> -> vector<64x32xf32>
    %32 = vector.extract_strided_slice %31 {offsets = [0, 0], sizes = [16, 32], strides = [1, 1]} : vector<64x32xf32> to vector<16x32xf32>
    %33 = vector.extract_strided_slice %31 {offsets = [16, 0], sizes = [16, 32], strides = [1, 1]} : vector<64x32xf32> to vector<16x32xf32>
    %34 = arith.addf %32, %33 : vector<16x32xf32>
    %35 = vector.extract_strided_slice %31 {offsets = [32, 0], sizes = [16, 32], strides = [1, 1]} : vector<64x32xf32> to vector<16x32xf32>
    %36 = arith.addf %34, %35 : vector<16x32xf32>
    %37 = vector.extract_strided_slice %31 {offsets = [48, 0], sizes = [16, 32], strides = [1, 1]} : vector<64x32xf32> to vector<16x32xf32>
    %38 = arith.addf %36, %37 : vector<16x32xf32>
    %c96 = arith.constant 96 : index
    %c48_12 = arith.constant 48 : index
    %39 = vector.load %arg2[%c96, %c48_12] : memref<200x128xf32, #tpu.memory_space<vmem>>, vector<32x32xf32>
    %c192 = arith.constant 192 : index
    %c0_13 = arith.constant 0 : index
    %40 = vector.load %arg2[%c192, %c0_13] : memref<200x128xf32, #tpu.memory_space<vmem>>, vector<1x32xf32>
    %cst_14 = arith.constant dense<0.000000e+00> : vector<16x32xf32>
    %41 = tpu.matmul %38, %39, %cst_14 {dimension_numbers = #tpu.dot_dimension_numbers<[1], [0], [0], [1], [0, 0, 1, 1], [], []>} : vector<16x32xf32>, vector<32x32xf32>, vector<16x32xf32> -> vector<16x32xf32>
    %42 = vector.broadcast %40 : vector<1x32xf32> to vector<16x32xf32>
    %43 = arith.addf %41, %42 : vector<16x32xf32>
    %c193 = arith.constant 193 : index
    %c0_15 = arith.constant 0 : index
    %44 = vector.load %arg2[%c193, %c0_15] : memref<200x128xf32, #tpu.memory_space<vmem>>, vector<1x32xf32>
    %c194 = arith.constant 194 : index
    %c0_16 = arith.constant 0 : index
    %45 = vector.load %arg2[%c194, %c0_16] : memref<200x128xf32, #tpu.memory_space<vmem>>, vector<1x32xf32>
    %46 = arith.addf %1, %43 : vector<16x32xf32>
    %cst_17 = arith.constant dense<0.000000e+00> : vector<16xf32>
    %47 = vector.multi_reduction <add>, %46, %cst_17 [1] : vector<16x32xf32> to vector<16xf32>
    %48 = vector.shape_cast %47 : vector<16xf32> to vector<16x1xf32>
    %cst_18 = arith.constant 3.200000e+01 : f32
    %49 = vector.broadcast %cst_18 : f32 to vector<16x1xf32>
    %50 = arith.divf %48, %49 : vector<16x1xf32>
    %51 = vector.broadcast %50 : vector<16x1xf32> to vector<16x32xf32>
    %52 = arith.subf %46, %51 : vector<16x32xf32>
    %53 = arith.mulf %52, %52 : vector<16x32xf32>
    %cst_19 = arith.constant dense<0.000000e+00> : vector<16xf32>
    %54 = vector.multi_reduction <add>, %53, %cst_19 [1] : vector<16x32xf32> to vector<16xf32>
    %55 = vector.shape_cast %54 : vector<16xf32> to vector<16x1xf32>
    %cst_20 = arith.constant 3.200000e+01 : f32
    %56 = vector.broadcast %cst_20 : f32 to vector<16x1xf32>
    %57 = arith.divf %55, %56 : vector<16x1xf32>
    %58 = vector.broadcast %50 : vector<16x1xf32> to vector<16x32xf32>
    %59 = arith.subf %46, %58 : vector<16x32xf32>
    %cst_21 = arith.constant 9.99999974E-6 : f32
    %60 = vector.broadcast %cst_21 : f32 to vector<16x1xf32>
    %61 = arith.addf %57, %60 : vector<16x1xf32>
    %62 = math.rsqrt %61 : vector<16x1xf32>
    %63 = vector.broadcast %62 : vector<16x1xf32> to vector<16x32xf32>
    %64 = arith.mulf %59, %63 : vector<16x32xf32>
    %65 = vector.broadcast %44 : vector<1x32xf32> to vector<16x32xf32>
    %66 = arith.mulf %64, %65 : vector<16x32xf32>
    %67 = vector.broadcast %45 : vector<1x32xf32> to vector<16x32xf32>
    %68 = arith.addf %66, %67 : vector<16x32xf32>
    %c0_22 = arith.constant 0 : index
    %c48_23 = arith.constant 48 : index
    %69 = vector.load %arg2[%c0_22, %c48_23] : memref<200x128xf32, #tpu.memory_space<vmem>>, vector<32x64xf32>
    %c195 = arith.constant 195 : index
    %c0_24 = arith.constant 0 : index
    %70 = vector.load %arg2[%c195, %c0_24] : memref<200x128xf32, #tpu.memory_space<vmem>>, vector<1x64xf32>
    %cst_25 = arith.constant dense<0.000000e+00> : vector<16x64xf32>
    %71 = tpu.matmul %68, %69, %cst_25 {dimension_numbers = #tpu.dot_dimension_numbers<[1], [0], [0], [1], [0, 0, 1, 1], [], []>} : vector<16x32xf32>, vector<32x64xf32>, vector<16x64xf32> -> vector<16x64xf32>
    %72 = vector.broadcast %70 : vector<1x64xf32> to vector<16x64xf32>
    %73 = arith.addf %71, %72 : vector<16x64xf32>
    %cst_26 = arith.constant 5.000000e-01 : f32
    %74 = vector.broadcast %cst_26 : f32 to vector<16x64xf32>
    %75 = arith.mulf %74, %73 : vector<16x64xf32>
    %cst_27 = arith.constant 0.707106769 : f32
    %76 = vector.broadcast %cst_27 : f32 to vector<16x64xf32>
    %77 = arith.mulf %73, %76 : vector<16x64xf32>
    %78 = math.erf %77 : vector<16x64xf32>
    %cst_28 = arith.constant 1.000000e+00 : f32
    %79 = vector.broadcast %cst_28 : f32 to vector<16x64xf32>
    %80 = arith.addf %79, %78 : vector<16x64xf32>
    %81 = arith.mulf %75, %80 : vector<16x64xf32>
    %c32 = arith.constant 32 : index
    %c48_29 = arith.constant 48 : index
    %82 = vector.load %arg2[%c32, %c48_29] : memref<200x128xf32, #tpu.memory_space<vmem>>, vector<64x32xf32>
    %c196 = arith.constant 196 : index
    %c0_30 = arith.constant 0 : index
    %83 = vector.load %arg2[%c196, %c0_30] : memref<200x128xf32, #tpu.memory_space<vmem>>, vector<1x32xf32>
    %cst_31 = arith.constant dense<0.000000e+00> : vector<16x32xf32>
    %84 = tpu.matmul %81, %82, %cst_31 {dimension_numbers = #tpu.dot_dimension_numbers<[1], [0], [0], [1], [0, 0, 1, 1], [], []>} : vector<16x64xf32>, vector<64x32xf32>, vector<16x32xf32> -> vector<16x32xf32>
    %85 = vector.broadcast %83 : vector<1x32xf32> to vector<16x32xf32>
    %86 = arith.addf %84, %85 : vector<16x32xf32>
    %c197 = arith.constant 197 : index
    %c0_32 = arith.constant 0 : index
    %87 = vector.load %arg2[%c197, %c0_32] : memref<200x128xf32, #tpu.memory_space<vmem>>, vector<1x32xf32>
    %c198 = arith.constant 198 : index
    %c0_33 = arith.constant 0 : index
    %88 = vector.load %arg2[%c198, %c0_33] : memref<200x128xf32, #tpu.memory_space<vmem>>, vector<1x32xf32>
    %89 = arith.addf %86, %68 : vector<16x32xf32>
    %cst_34 = arith.constant dense<0.000000e+00> : vector<16xf32>
    %90 = vector.multi_reduction <add>, %89, %cst_34 [1] : vector<16x32xf32> to vector<16xf32>
    %91 = vector.shape_cast %90 : vector<16xf32> to vector<16x1xf32>
    %cst_35 = arith.constant 3.200000e+01 : f32
    %92 = vector.broadcast %cst_35 : f32 to vector<16x1xf32>
    %93 = arith.divf %91, %92 : vector<16x1xf32>
    %94 = vector.broadcast %93 : vector<16x1xf32> to vector<16x32xf32>
    %95 = arith.subf %89, %94 : vector<16x32xf32>
    %96 = arith.mulf %95, %95 : vector<16x32xf32>
    %cst_36 = arith.constant dense<0.000000e+00> : vector<16xf32>
    %97 = vector.multi_reduction <add>, %96, %cst_36 [1] : vector<16x32xf32> to vector<16xf32>
    %98 = vector.shape_cast %97 : vector<16xf32> to vector<16x1xf32>
    %cst_37 = arith.constant 3.200000e+01 : f32
    %99 = vector.broadcast %cst_37 : f32 to vector<16x1xf32>
    %100 = arith.divf %98, %99 : vector<16x1xf32>
    %101 = vector.broadcast %93 : vector<16x1xf32> to vector<16x32xf32>
    %102 = arith.subf %89, %101 : vector<16x32xf32>
    %cst_38 = arith.constant 9.99999974E-6 : f32
    %103 = vector.broadcast %cst_38 : f32 to vector<16x1xf32>
    %104 = arith.addf %100, %103 : vector<16x1xf32>
    %105 = math.rsqrt %104 : vector<16x1xf32>
    %106 = vector.broadcast %105 : vector<16x1xf32> to vector<16x32xf32>
    %107 = arith.mulf %102, %106 : vector<16x32xf32>
    %108 = vector.broadcast %87 : vector<1x32xf32> to vector<16x32xf32>
    %109 = arith.mulf %107, %108 : vector<16x32xf32>
    %110 = vector.broadcast %88 : vector<1x32xf32> to vector<16x32xf32>
    %111 = arith.addf %109, %110 : vector<16x32xf32>
    %c0_39 = arith.constant 0 : index
    %c0_40 = arith.constant 0 : index
    %c0_41 = arith.constant 0 : index
    %112 = vector.load %arg3[%c0_39, %c0_40, %c0_41] : memref<1x16x32xf32, #tpu.memory_space<vmem>>, vector<1x16x32xf32>
    %113 = vector.shape_cast %112 : vector<1x16x32xf32> to vector<16x32xf32>
    %114 = vector.shape_cast %111 : vector<16x32xf32> to vector<1x16x32xf32>
    tpu.vector_store %arg3[%c0_39, %c0_40, %c0_41], %114 {strides = array<i32>} : memref<1x16x32xf32, #tpu.memory_space<vmem>>, vector<1x16x32xf32>,
    return
  }
  func.func @transform_0(%arg0: i32) -> (i32, i32, i32) {
    %c0_i32 = arith.constant 0 : i32
    %c0_i32_0 = arith.constant 0 : i32
    %c0_i32_1 = arith.constant 0 : i32
    return %arg0, %c0_i32, %c0_i32_0 : i32, i32, i32
  }
  func.func @transform_1(%arg0: i32) -> (i32, i32) {
    %c0_i32 = arith.constant 0 : i32
    %c0_i32_0 = arith.constant 0 : i32
    %c0_i32_1 = arith.constant 0 : i32
    return %c0_i32, %c0_i32_0 : i32, i32
  }
  func.func @transform_2(%arg0: i32) -> (i32, i32, i32) {
    %c0_i32 = arith.constant 0 : i32
    %c0_i32_0 = arith.constant 0 : i32
    %c0_i32_1 = arith.constant 0 : i32
    return %arg0, %c0_i32, %c0_i32_0 : i32, i32, i32
  }
}

</mosaic_0001>

<bundles_post_ra>
// kernel: _call_batched.1
= control target key start
LH: loop header
LB: loop body
LE: loop exit
PB: predicated region body
PF: predicated region fallthrough
CT: control target
= control target key end

     0   :  { %7 = vsyncpa [#allocation3], 0  ;;  %s2009_s0 = inlined_call_operand.hbm [shape: f32[1,16,32], index: 0, kind: input, shape index: {}]   ;;  %s2010_s1 = inlined_call_operand.hbm [shape: f32[200,128], index: 1, kind: input, shape index: {}]   ;;  %s2011_s2 = inlined_call_operand.hbm [shape: f32[1,16,32], index: 2, kind: output, shape index: {}]  }
   0x1   :  { %8 = vsyncpa [#allocation6], 0 }
   0x2   :  { %9 = vsyncpa [#allocation4], 0  ;;  %s1701_s9 = smov [#allocation2]   ;;  %s1629_s13 = scalar_lea.hbm %s2009_s0, 256 }
   0x3   :  { %s15_s10 = sshll.u32 %s1701_s9, 4  ;;  %p1630_p0 = scmp.ne.s32.totalorder %s2009_s0, %s1629_s13  ;;  %s16_s10 = int_to_ptr.vmem [resolvable:$true] %s15_s10 }
   0x4   :  { %p1633_p1 = scmp.lt.u32.totalorder %s1629_s13, %s2009_s0 }
   0x6   :  { %p1635_p2 = pnand %p1633_p1, %p1630_p0 }
   0x8   :  { %1638 = shalt.err (!%p1635_p2)
}
   0x9   :  { %s1639_s18 = scalar_lea.vmem %s16_s10, 256  ;;  %p1644_p4 = scmp.lt.s32.totalorder %s16_s10, %s16_s10 }
   0xa   :  { %p1640_p3 = scmp.ne.s32.totalorder %s16_s10, %s1639_s18  ;;  %p1645_p5 = scmp.lt.s32.totalorder %s1639_s18, %s1639_s18 }
   0xc   :  { %p1646_p6 = por %p1645_p5, %p1644_p4 }
   0xe   :  { %p1647_p7 = pnand %p1646_p6, %p1640_p3 }
  0x10   :  { %1650 = shalt.err (!%p1647_p7)
}
  0x11   :  { %s1702_s19 = smov 128   ;;  %s1703_s20 = smov 8  }
  0x12   :  { %21 = dma.hbm_to_vmem [thread:$0]  %s2009_s0, 256, %s16_s10, [#allocation3], %s1702_s19, %s1702_s19, %s1703_s20  }
  0x13   :  { %s1704_s23 = smov [#allocation5]   ;;  %s1651_s27 = scalar_lea.hbm %s2010_s1, 3200 }
  0x14   :  { %s27_s24 = sshll.u32 %s1704_s23, 4  ;;  %p1652_p8 = scmp.ne.s32.totalorder %s2010_s1, %s1651_s27  ;;  %s28_s24 = int_to_ptr.vmem [resolvable:$true] %s27_s24 }
  0x15   :  { %p1655_p9 = scmp.lt.u32.totalorder %s1651_s27, %s2010_s1 }
  0x17   :  { %p1657_p10 = pnand %p1655_p9, %p1652_p8 }
  0x19   :  { %1660 = shalt.err (!%p1657_p10)
}
  0x1a   :  { %s1661_s4 = scalar_lea.vmem %s28_s24, 3200  ;;  %p1666_p12 = scmp.lt.s32.totalorder %s28_s24, %s28_s24 }
  0x1b   :  { %p1662_p11 = scmp.ne.s32.totalorder %s28_s24, %s1661_s4  ;;  %p1667_p13 = scmp.lt.s32.totalorder %s1661_s4, %s1661_s4 }
  0x1d   :  { %p1668_p0 = por %p1667_p13, %p1666_p12 }
  0x1f   :  { %p1669_p1 = pnand %p1668_p0, %p1662_p11 }
  0x21   :  { %1672 = shalt.err (!%p1669_p1)
}
  0x22   :  { %33 = dma.hbm_to_vmem [thread:$0]  %s2010_s1, 3200, %s28_s24, [#allocation6], %s1702_s19, %s1702_s19, %s1703_s20  }
  0x23   :  { %1695 = dma.done.wait [#allocation3], 256  }
  0x24   :  { %1696 = vsyncadd [#allocation3], 4294967040 }
  0x25   :  { %1697 = dma.done.wait [#allocation6], 3200  }
  0x26   :  { %1698 = vsyncadd [#allocation6], 4294964096  ;;  %vm42_vm0 = vcmask 261120   ;;  %vm45_vm1 = vcmask 523264   ;;  %v1757_v0 = vld [vmem:[#allocation2] sm:$0xff]  ;;  %v1759_v1 = vld [vmem:[#allocation5] sm:$0xff] }
  0x27   :  { %vm48_vm2 = vcmask 785408   ;;  %s1705_s6 = smov 32   ;;  %s1706_s7 = smov 64   ;;  %v1763_v2 = vld [vmem:[#allocation5 + $0x8] sm:$0xff]  ;;  %v1765_v3 = vld [vmem:[#allocation5 + $0x10] sm:$0xff]  ;;  %v1767_v4 = vld [vmem:[#allocation5 + $0x18] sm:$0xff] }
  0x28   :  { %53 = vrot.lane.b32.xlu0 %v1757_v0, %s1705_s6  ;;  %65 = vrot.lane.b32.xlu1 %v1757_v0, %s1706_s7  ;;  %v43_v5 = vsel %vm42_vm0, %v1757_v0, 0.0  ;;  %v1771_v6 = vld [vmem:[#allocation2 + $0x8] sm:$0xff]  ;;  %v1384_v7 = vpack.c.bf16 %v1763_v2, %v1759_v1  ;;  %v1388_v9 = vpack.c.bf16 %v1767_v4, %v1765_v3  ;;  %v1779_v10 = vld [vmem:[#allocation5 + $0x20] sm:$0xff]  ;;  %v1781_v11 = vld [vmem:[#allocation5 + $0x28] sm:$0xff]  ;;  %s1707_s1 = smov 96   ;;  %vm236_vm4 = vcmask 64512  }
  0x29   :  { %v46_v8 = vsel %vm45_vm1, %v43_v5, 0.0  ;;  %v1392_v12 = vpack.c.bf16 %v1781_v11, %v1779_v10  ;;  %v1787_v13 = vld [vmem:[#allocation5 + $0x30] sm:$0xff]  ;;  %v1789_v14 = vld [vmem:[#allocation5 + $0x38] sm:$0xff]  ;;  %v1795_v16 = vld [vmem:[#allocation5 + $0x40] sm:$0xff]  ;;  %v44_v28 = vsel %vm42_vm0, %v1771_v6, 0.0  ;;  %s1708_s8 = smov 120  }
  0x2a   :  { %1275 = vmatprep.mubr.msk.f32.mxu0 %vm48_vm2, %v46_v8  ;;  %1385 = vmatprep.subr.bf16.mxu0 %v1384_v7  ;;  %v1396_v15 = vpack.c.bf16 %v1789_v14, %v1787_v13  ;;  %v1797_v17 = vld [vmem:[#allocation5 + $0x48] sm:$0xff]  ;;  %v1801_v19 = vld [vmem:[#allocation5 + $0x50] sm:$0xff]  ;;  %v1803_v20 = vld [vmem:[#allocation5 + $0x58] sm:$0xff]  ;;  %v47_v29 = vsel %vm45_vm1, %v44_v28, 0.0  ;;  %s1709_s9 = smov 80   ;;  %s1710_s10 = smov 112  }
  0x2b   :  { %1387 = vmatpush3.bf16.msra.mxu0 %v1384_v7  ;;  %v1400_v18 = vpack.c.bf16 %v1797_v17, %v1795_v16  ;;  %v1404_v21 = vpack.c.bf16 %v1803_v20, %v1801_v19  ;;  %v1807_v22 = vld [vmem:[#allocation5 + $0x60] sm:$0xff]  ;;  %v1809_v23 = vld [vmem:[#allocation5 + $0x68] sm:$0xff]  ;;  %v1813_v25 = vld [vmem:[#allocation5 + $0x70] sm:$0xff]  ;;  %s1711_s11 = smov [#allocation7]  }
  0x2c   :  { %55 = vrot.lane.b32.xlu0 %v1771_v6, %s1705_s6  ;;  %67 = vrot.lane.b32.xlu1 %v1771_v6, %s1706_s7  ;;  %v1408_v24 = vpack.c.bf16 %v1809_v23, %v1807_v22  ;;  %v1815_v26 = vld [vmem:[#allocation5 + $0x78] sm:$0xff]  ;;  %vm1124_vm3 = vmneg %vm48_vm2  ;;  %v100_v42 = vld [vmem:[#allocation5 + $0x88] sm:$0xff]  ;;  %s1105_s12 = sshll.u32 %s1711_s11, 4  ;;  %s1106_s12 = int_to_ptr.vmem [resolvable:$true] %s1105_s12 }
  0x2d   :  { %1389 = vmatprep.subr.bf16.mxu0 %v1388_v9  ;;  %v1412_v27 = vpack.c.bf16 %v1815_v26, %v1813_v25  ;;  %v99_v43 = vld [vmem:[#allocation5 + $0x80] sm:$0xff]  ;;  %v102_v49 = vld [vmem:[#allocation5 + $0x98] sm:$0xff]  ;;  %v101_v50 = vld [vmem:[#allocation5 + $0x90] sm:$0xff]  ;;  %s1673_s13 = scalar_lea.vmem %s1106_s12, 256  ;;  %p1678_p3 = scmp.lt.s32.totalorder %s1106_s12, %s1106_s12 }
  0x2e   :  { %v104_v55 = vld [vmem:[#allocation5 + $0xa8] sm:$0xff]  ;;  %v103_v56 = vld [vmem:[#allocation5 + $0xa0] sm:$0xff]  ;;  %v106_v62 = vld [vmem:[#allocation5 + $0xb8] sm:$0xff]  ;;  %p1674_p2 = scmp.ne.s32.totalorder %s1106_s12, %s1673_s13  ;;  %p1679_p4 = scmp.lt.s32.totalorder %s1673_s13, %s1673_s13 }
  0x2f   :  { %1391 = vmatpush3.bf16.msra.mxu0 %v1388_v9  ;;  %v105_v63 = vld [vmem:[#allocation5 + $0xb0] sm:$0xff]  ;;  %vm1854_vm5 = vmpackc.low %vm236_vm4, %vm236_vm4 }
  0x30   :  { %75 = vrot.lane.b32.xlu0 %v1757_v0, %s1707_s1  ;;  %77 = vrot.lane.b32.xlu1 %v1771_v6, %s1707_s1  ;;  %p1680_p5 = por %p1679_p4, %p1678_p3 }
  0x31   :  { %1393 = vmatprep.subr.bf16.mxu0 %v1392_v12 }
  0x32   :  { %p1681_p6 = pnand %p1680_p5, %p1674_p2 }
  0x33   :  { %1395 = vmatpush3.bf16.msra.mxu0 %v1392_v12 }
  0x34   :  { %1397 = vmatprep.subr.bf16.mxu0 %v1396_v15 }
  0x37   :  { %1399 = vmatpush3.bf16.msra.mxu0 %v1396_v15 }
  0x38   :  { %1401 = vmatprep.subr.bf16.mxu0 %v1400_v18 }
  0x3b   :  { %1403 = vmatpush3.bf16.msra.mxu0 %v1400_v18 }
  0x3c   :  { %1405 = vmatprep.subr.bf16.mxu0 %v1404_v21 }
  0x3f   :  { %1407 = vmatpush3.bf16.msra.mxu0 %v1404_v21 }
  0x40   :  { %1409 = vmatprep.subr.bf16.mxu0 %v1408_v24 }
  0x43   :  { %1411 = vmatpush3.bf16.msra.mxu0 %v1408_v24 }
  0x44   :  { %1413 = vmatprep.subr.bf16.mxu0 %v1412_v27 }
  0x47   :  { %1415 = vmatpush3.bf16.msra.mxu0 %v1412_v27 }
  0x4a   :  { %1276 = vmatmul.mubr.msk.f32.vlgmr.msra.gmra.mrb[0].mxu0 %vm48_vm2, %v47_v29 }
  0x9a   :  { %v54_v30 = vpop.permute.xlu0 %53  ;;  %v66_v31 = vpop.permute.xlu1 %65 }
  0x9b   :  { %v59_v32 = vsel %vm42_vm0, 0.0, %v54_v30  ;;  %v71_v36 = vsel %vm45_vm1, 0.0, %v66_v31 }
  0x9c   :  { %v61_v33 = vsel %vm45_vm1, %v59_v32, 0.0 }
  0x9d   :  { %1278 = vmatprep.mubr.msk.f32.mxu0 %vm48_vm2, %v61_v33 }
  0x9e   :  { %v56_v34 = vpop.permute.xlu0 %55  ;;  %v68_v37 = vpop.permute.xlu1 %67 }
  0x9f   :  { %v60_v35 = vsel %vm42_vm0, 0.0, %v56_v34  ;;  %v72_v39 = vsel %vm45_vm1, 0.0, %v68_v37 }
  0xa0   :  { %v62_v38 = vsel %vm45_vm1, %v60_v35, 0.0 }
  0xa1   :  { %1279 = vmatmul.mubr.msk.f32.gmra.mrb[2].mxu0 %vm48_vm2, %v62_v38 }
  0xa2   :  { %1281 = vmatprep.mubr.msk.f32.mxu0 %vm48_vm2, %v71_v36  ;;  %v76_v40 = vpop.permute.xlu0 %75  ;;  %v78_v41 = vpop.permute.xlu1 %77 }
  0xa5   :  { %1282 = vmatmul.mubr.msk.f32.gmra.mrb[4].mxu0 %vm48_vm2, %v72_v39 }
  0xa6   :  { %1284 = vmatprep.mubr.msk.f32.mxu0 %vm1124_vm3, %v76_v40 }
  0xa9   :  { %1285 = vmatmul.mubr.msk.f32.gmra.mrb[6].mxu0 %vm1124_vm3, %v78_v41 }
 0x11d   :  { %v1277_v44 = vpop.f32.mrb[0].mxu0 }
 0x11e   :  { %v1834_v45 = vadd.f32 %v1277_v44, %v100_v42  ;;  %v173_v46 = vpop.f32.mrb[1].mxu0 }
 0x11f   :  { %v174_v47 = vadd.f32 %v173_v46, %v99_v43 }
 0x121   :  { %1303 = vmatprep.mubr.msk.f32.mxu1 %vm236_vm4, %v174_v47  ;;  %v1838_v48 = vpack.i.bf16 %v1834_v45, %v174_v47 }
 0x123   :  { %1506 = vrot.lane.b32.xlu0 %v1838_v48, %s1708_s8 }
 0x174   :  { %v1280_v51 = vpop.f32.mrb[2].mxu0 }
 0x175   :  { %v189_v52 = vadd.f32 %v1280_v51, %v102_v49  ;;  %v183_v53 = vpop.f32.mrb[3].mxu0 }
 0x176   :  { %v184_v54 = vadd.f32 %v183_v53, %v101_v50 }
 0x178   :  { %v1841_v57 = vpack.i.bf16 %v189_v52, %v184_v54  ;;  %v1283_v58 = vpop.f32.mrb[4].mxu0 }
 0x179   :  { %v199_v59 = vadd.f32 %v1283_v58, %v104_v55  ;;  %v193_v60 = vpop.f32.mrb[5].mxu0 }
 0x17a   :  { %1511 = vrot.lane.b32.xlu1 %v1841_v57, %s1708_s8  ;;  %v194_v61 = vadd.f32 %v193_v60, %v103_v56 }
 0x17c   :  { %v1844_v5 = vpack.i.bf16 %v199_v59, %v194_v61  ;;  %v1286_v7 = vpop.f32.mrb[6].mxu0 }
 0x17d   :  { %v209_v8 = vadd.f32 %v1286_v7, %v106_v62  ;;  %v203_v9 = vpop.f32.mrb[7].mxu0 }
 0x17e   :  { %1516 = vrot.lane.b32.xlu0 %v1844_v5, %s1708_s8  ;;  %v204_v12 = vadd.f32 %v203_v9, %v105_v63 }
 0x180   :  { %v1847_v15 = vpack.i.bf16 %v209_v8, %v204_v12 }
 0x182   :  { %1521 = vrot.lane.b32.xlu1 %v1847_v15, %s1708_s8  ;;  %390 = vrot.lane.b32.xlu0 %v99_v43, %s1709_s9 }
 0x186   :  { %392 = vrot.lane.b32.xlu1 %v100_v42, %s1709_s9  ;;  %394 = vrot.lane.b32.xlu0 %v101_v50, %s1709_s9 }
 0x18a   :  { %396 = vrot.lane.b32.xlu1 %v102_v49, %s1709_s9  ;;  %398 = vrot.lane.b32.xlu0 %v103_v56, %s1709_s9 }
 0x18e   :  { %400 = vrot.lane.b32.xlu1 %v104_v55, %s1709_s9  ;;  %402 = vrot.lane.b32.xlu0 %v105_v63, %s1709_s9 }
 0x192   :  { %404 = vrot.lane.b32.xlu1 %v106_v62, %s1709_s9 }
 0x195   :  { %v1507_v18 = vpop.permute.xlu0 %1506 }
 0x196   :  { %v1509_v21 = vunpack.i.h.bf16 %v1507_v18  ;;  %v1508_v24 = vunpack.i.l.bf16 %v1507_v18 }
 0x198   :  { %v1416_v28 = vpack.c.bf16 %v1509_v21, %v1508_v24 }
 0x19a   :  { %1418 = vmatprep.subr.msk.bf16.mxu1 %vm1854_vm5, %v1416_v28 }
 0x19b   :  { %1421 = vmatpush3.bf16.xpose.msk.msra.mxu1 %vm1854_vm5, %v1416_v28 }
 0x1ec   :  { %v1512_v29 = vpop.permute.xlu1 %1511 }
 0x1ed   :  { %v1514_v30 = vunpack.i.h.bf16 %v1512_v29  ;;  %v1513_v31 = vunpack.i.l.bf16 %v1512_v29 }
 0x1ef   :  { %v1422_v32 = vpack.c.bf16 %v1514_v30, %v1513_v31 }
 0x1f0   :  { %v1517_v33 = vpop.permute.xlu0 %1516 }
 0x1f1   :  { %1424 = vmatprep.subr.msk.bf16.mxu1 %vm1854_vm5, %v1422_v32  ;;  %v1519_v34 = vunpack.i.h.bf16 %v1517_v33  ;;  %v1518_v35 = vunpack.i.l.bf16 %v1517_v33 }
 0x1f2   :  { %1427 = vmatpush3.bf16.xpose.msk.msra.mxu1 %vm1854_vm5, %v1422_v32 }
 0x1f3   :  { %v1428_v36 = vpack.c.bf16 %v1519_v34, %v1518_v35 }
 0x1f4   :  { %v1522_v37 = vpop.permute.xlu1 %1521  ;;  %v391_v41 = vpop.permute.xlu0 %390 }
 0x1f5   :  { %1430 = vmatprep.subr.msk.bf16.mxu1 %vm1854_vm5, %v1428_v36  ;;  %v1524_v38 = vunpack.i.h.bf16 %v1522_v37  ;;  %v1523_v39 = vunpack.i.l.bf16 %v1522_v37 }
 0x1f7   :  { %v1434_v40 = vpack.c.bf16 %v1524_v38, %v1523_v39 }
 0x1f8   :  { %v393_v42 = vpop.permute.xlu1 %392  ;;  %v395_v47 = vpop.permute.xlu0 %394 }
 0x1fa   :  { %1433 = vmatpush3.bf16.xpose.msk.msra.mxu1 %vm1854_vm5, %v1428_v36 }
 0x1fb   :  { %1436 = vmatprep.subr.msk.bf16.mxu1 %vm1854_vm5, %v1434_v40 }
 0x1fc   :  { %v397_v50 = vpop.permute.xlu1 %396  ;;  %v399_v60 = vpop.permute.xlu0 %398 }
 0x200   :  { %v401_v7 = vpop.permute.xlu1 %400  ;;  %v403_v27 = vpop.permute.xlu0 %402 }
 0x202   :  { %1439 = vmatpush3.bf16.xpose.msk.msra.mxu1 %vm1854_vm5, %v1434_v40 }
 0x204   :  { %v405_v33 = vpop.permute.xlu1 %404 }
 0x209   :  { %1304 = vmatmul.mubr.msk.f32.vlgmr.msra.gmra.mrb[0].mxu1 %vm236_vm4, %v1834_v45 }
 0x20a   :  { %1306 = vmatprep.mubr.msk.f32.mxu1 %vm236_vm4, %v184_v54 }
 0x20d   :  { %1307 = vmatmul.mubr.msk.f32.gmra.mrb[2].mxu1 %vm236_vm4, %v189_v52 }
 0x20e   :  { %1309 = vmatprep.mubr.msk.f32.mxu1 %vm236_vm4, %v194_v61 }
 0x211   :  { %1310 = vmatmul.mubr.msk.f32.gmra.mrb[4].mxu1 %vm236_vm4, %v199_v59 }
 0x212   :  { %1312 = vmatprep.mubr.msk.f32.mxu1 %vm236_vm4, %v204_v12 }
 0x215   :  { %1313 = vmatmul.mubr.msk.f32.gmra.mrb[6].mxu1 %vm236_vm4, %v209_v8 }
 0x2dc   :  { %v1305_v43 = vpop.f32.mrb[0].mxu1 }
 0x2dd   :  { %v375_v44 = vmul.f32 0.35355338, %v1305_v43  ;;  %v335_v46 = vpop.f32.mrb[1].mxu1 }
 0x2de   :  { %v374_v49 = vmul.f32 0.35355338, %v335_v46 }
 0x2df   :  { %v415_v45 = vadd.f32 %v393_v42, %v375_v44 }
 0x2e0   :  { %v414_v51 = vadd.f32 %v391_v41, %v374_v49  ;;  %v1308_v53 = vpop.f32.mrb[2].mxu1 }
 0x2e1   :  { %v377_v52 = vmul.f32 0.35355338, %v1308_v53  ;;  %v345_v54 = vpop.f32.mrb[3].mxu1  ;;  %v425_v55 = vsel %vm45_vm1, %v415_v45, -inf }
 0x2e2   :  { %v376_v56 = vmul.f32 0.35355338, %v345_v54  ;;  %426 = vmax.xlane.f32.xlu1 %v425_v55  ;;  %v422_v58 = vsel %vm45_vm1, %v414_v51, -inf }
 0x2e3   :  { %v417_v59 = vadd.f32 %v397_v50, %v377_v52  ;;  %423 = vmax.xlane.f32.xlu0 %v422_v58 }
 0x2e4   :  { %v1311_v61 = vpop.f32.mrb[4].mxu1  ;;  %v416_v62 = vadd.f32 %v395_v47, %v376_v56 }
 0x2e5   :  { %v355_v63 = vpop.f32.mrb[5].mxu1  ;;  %v431_v8 = vsel %vm45_vm1, %v417_v59, -inf  ;;  %v379_v9 = vmul.f32 0.35355338, %v1311_v61 }
 0x2e6   :  { %v378_v12 = vmul.f32 0.35355338, %v355_v63  ;;  %v428_v28 = vsel %vm45_vm1, %v416_v62, -inf }
 0x2e7   :  { %432 = vmax.xlane.f32.xlu0 %v431_v8  ;;  %v419_v29 = vadd.f32 %v401_v7, %v379_v9 }
 0x2e8   :  { %v418_v18 = vadd.f32 %v399_v60, %v378_v12  ;;  %v1314_v21 = vpop.f32.mrb[6].mxu1 }
 0x2e9   :  { %v365_v24 = vpop.f32.mrb[7].mxu1  ;;  %v381_v30 = vmul.f32 0.35355338, %v1314_v21  ;;  %v437_v36 = vsel %vm45_vm1, %v419_v29, -inf }
 0x2ea   :  { %v380_v31 = vmul.f32 0.35355338, %v365_v24  ;;  %v434_v32 = vsel %vm45_vm1, %v418_v18, -inf }
 0x2eb   :  { %429 = vmax.xlane.f32.xlu0 %v428_v28  ;;  %435 = vmax.xlane.f32.xlu1 %v434_v32  ;;  %v1895_v35 = vadd.f32 %v405_v33, %v381_v30 }
 0x2ec   :  { %v1893_v34 = vadd.f32 %v403_v27, %v380_v31 }
 0x2ed   :  { %v443_v38 = vsel %vm45_vm1, %v1895_v35, -inf }
 0x2ee   :  { %v440_v37 = vsel %vm45_vm1, %v1893_v34, -inf }
 0x2ef   :  { %438 = vmax.xlane.f32.xlu0 %v437_v36  ;;  %441 = vmax.xlane.f32.xlu1 %v440_v37 }
 0x2f3   :  { %444 = vmax.xlane.f32.xlu0 %v443_v38 }
 0x300   :  { %1526 = vrot.lane.b32.xlu1 %v1838_v48, %s1710_s10 }
 0x309   :  { %1531 = vrot.lane.b32.xlu0 %v1841_v57, %s1710_s10 }
 0x36f   :  { %v427_v39 = vpop.xlane.xlu1 %426 }
 0x370   :  { %v447_v40 = vsub.f32 %v415_v45, %v427_v39  ;;  %v424_v41 = vpop.xlane.xlu0 %423 }
 0x371   :  { %v446_v42 = vsub.f32 %v414_v51, %v424_v41 }
 0x372   :  { %v456_v43 = vmul.f32 1.442695, %v447_v40 }
 0x373   :  { %v454_v44 = vmul.f32 1.442695, %v446_v42 }
 0x374   :  { %1585 = vpow2.f32 %v456_v43  ;;  %v433_v46 = vpop.xlane.xlu0 %432 }
 0x375   :  { %1587 = vpow2.f32 %v454_v44  ;;  %v449_v47 = vsub.f32 %v417_v59, %v433_v46 }
 0x377   :  { %v460_v49 = vmul.f32 1.442695, %v449_v47 }
 0x378   :  { %v430_v50 = vpop.xlane.xlu0 %429  ;;  %v436_v53 = vpop.xlane.xlu1 %435 }
 0x379   :  { %1589 = vpow2.f32 %v460_v49  ;;  %v448_v52 = vsub.f32 %v416_v62, %v430_v50  ;;  %v450_v54 = vsub.f32 %v418_v18, %v436_v53 }
 0x37b   :  { %v458_v48 = vmul.f32 1.442695, %v448_v52  ;;  %v462_v55 = vmul.f32 1.442695, %v450_v54 }
 0x37c   :  { %v439_v56 = vpop.xlane.xlu0 %438  ;;  %v442_v57 = vpop.xlane.xlu1 %441 }
 0x37d   :  { %1591 = vpow2.f32 %v458_v48  ;;  %v451_v45 = vsub.f32 %v419_v29, %v439_v56  ;;  %v452_v37 = vsub.f32 %v1893_v34, %v442_v57  ;;  %v1550_v34 = vpack.i.bf16 %v1815_v26, %v1813_v25 }
 0x37e   :  { %v1906_v58 = vpop.eup %1585  ;;  %1593 = vpow2.f32 %v462_v55 }
 0x37f   :  { %v1588_v51 = vpop.eup %1587  ;;  %v464_v60 = vmul.f32 1.442695, %v451_v45  ;;  %v473_v59 = vsel %vm45_vm1, %v1906_v58, 0.0  ;;  %v466_v39 = vmul.f32 1.442695, %v452_v37 }
 0x380   :  { %474 = vadd.xlane.f32.xlu0 %v473_v59  ;;  %v445_v61 = vpop.xlane.xlu0 %444  ;;  %v1527_v63 = vpop.permute.xlu1 %1526  ;;  %v470_v62 = vsel %vm45_vm1, %v1588_v51, 0.0 }
 0x381   :  { %1595 = vpow2.f32 %v464_v60  ;;  %v1529_v7 = vunpack.i.h.bf16 %v1527_v63  ;;  %v1528_v8 = vunpack.i.l.bf16 %v1527_v63  ;;  %471 = vadd.xlane.f32.xlu1 %v470_v62  ;;  %v453_v38 = vsub.f32 %v1895_v35, %v445_v61 }
 0x382   :  { %1597 = vpow2.f32 %v466_v39  ;;  %v1152_v39 = vld [vmem:[#allocation5 + $0xc0] ss:$0 sm:$0xff] }
 0x383   :  { %v1911_v9 = vpop.eup %1589  ;;  %v1440_v12 = vpack.c.bf16 %v1529_v7, %v1528_v8  ;;  %v468_v40 = vmul.f32 1.442695, %v453_v38 }
 0x384   :  { %v1532_v18 = vpop.permute.xlu0 %1531  ;;  %v479_v21 = vsel %vm45_vm1, %v1911_v9, 0.0 }
 0x385   :  { %v1534_v24 = vunpack.i.h.bf16 %v1532_v18  ;;  %v1533_v27 = vunpack.i.l.bf16 %v1532_v18  ;;  %480 = vadd.xlane.f32.xlu0 %v479_v21  ;;  %1441 = vmatprep.subr.bf16.mxu0 %v1440_v12  ;;  %1599 = vpow2.f32 %v468_v40 }
 0x386   :  { %1443 = vmatpush3.bf16.msra.mxu0 %v1440_v12 }
 0x387   :  { %v1592_v28 = vpop.eup %1591  ;;  %v1444_v29 = vpack.c.bf16 %v1534_v24, %v1533_v27 }
 0x388   :  { %v476_v30 = vsel %vm45_vm1, %v1592_v28, 0.0  ;;  %v1916_v31 = vpop.eup %1593 }
 0x389   :  { %477 = vadd.xlane.f32.xlu1 %v476_v30  ;;  %1445 = vmatprep.subr.bf16.mxu0 %v1444_v29  ;;  %v482_v36 = vsel %vm45_vm1, %v1916_v31, 0.0 }
 0x38a   :  { %1447 = vmatpush3.bf16.msra.mxu0 %v1444_v29 }
 0x38b   :  { %v1918_v32 = vpop.eup %1595 }
 0x38c   :  { %v485_v33 = vsel %vm45_vm1, %v1918_v32, 0.0  ;;  %v1930_v41 = vpop.eup %1597 }
 0x38d   :  { %486 = vadd.xlane.f32.xlu0 %v485_v33  ;;  %483 = vadd.xlane.f32.xlu1 %v482_v36 }
 0x38f   :  { %v1932_v42 = vpop.eup %1599 }
 0x390   :  { %v491_v43 = vsel %vm45_vm1, %v1932_v42, 0.0 }
 0x39e   :  { %1536 = vrot.lane.b32.xlu1 %v1844_v5, %s1710_s10  ;;  %v488_v5 = vsel %vm45_vm1, %v1930_v41, 0.0 }
 0x3a3   :  { %1541 = vrot.lane.b32.xlu0 %v1847_v15, %s1710_s10  ;;  %v1545_v15 = vpack.i.bf16 %v1809_v23, %v1807_v22 }
 0x3c2   :  { %492 = vadd.xlane.f32.xlu0 %v491_v43  ;;  %489 = vadd.xlane.f32.xlu1 %v488_v5 }
 0x3d3   :  { %1546 = vrot.lane.b32.xlu1 %v1545_v15, %s1709_s9 }
 0x3d8   :  { %1551 = vrot.lane.b32.xlu0 %v1550_v34, %s1709_s9 }
 0x40d   :  { %v475_v44 = vpop.xlane.xlu0 %474 }
 0x40e   :  { %v472_v35 = vpop.xlane.xlu1 %471 }
 0x40f   :  { %1601 = vrcp.f32 %v472_v35 }
 0x410   :  { %1603 = vrcp.f32 %v475_v44 }
 0x412   :  { %v481_v46 = vpop.xlane.xlu0 %480 }
 0x416   :  { %v478_v47 = vpop.xlane.xlu1 %477 }
 0x417   :  { %1605 = vrcp.f32 %v478_v47 }
 0x418   :  { %1607 = vrcp.f32 %v481_v46 }
 0x419   :  { %v1602_v49 = vpop.eup %1601 }
 0x41a   :  { %v487_v50 = vpop.xlane.xlu0 %486  ;;  %v484_v53 = vpop.xlane.xlu1 %483  ;;  %v502_v52 = vmul.f32 %v1602_v49, %v1588_v51 }
 0x41b   :  { %1609 = vrcp.f32 %v484_v53  ;;  %v1604_v57 = vpop.eup %1603 }
 0x41c   :  { %1331 = vmatprep.mubr.msk.f32.mxu0 %vm45_vm1, %v502_v52  ;;  %v503_v51 = vmul.f32 %v1604_v57, %v1906_v58  ;;  %1611 = vrcp.f32 %v487_v50 }
 0x41e   :  { %v1542_v22 = vpop.permute.xlu0 %1541  ;;  %v1537_v23 = vpop.permute.xlu1 %1536 }
 0x41f   :  { %v1544_v25 = vunpack.i.h.bf16 %v1542_v22  ;;  %v1543_v26 = vunpack.i.l.bf16 %v1542_v22  ;;  %v1539_v54 = vunpack.i.h.bf16 %v1537_v23  ;;  %v1538_v48 = vunpack.i.l.bf16 %v1537_v23 }
 0x421   :  { %v1448_v55 = vpack.c.bf16 %v1539_v54, %v1538_v48  ;;  %v1452_v56 = vpack.c.bf16 %v1544_v25, %v1543_v26  ;;  %v1606_v45 = vpop.eup %1605  ;;  %v1560_v25 = vpack.i.bf16 %v1767_v4, %v1765_v3  ;;  %v1565_v26 = vpack.i.bf16 %v1781_v11, %v1779_v10 }
 0x422   :  { %v504_v60 = vmul.f32 %v1606_v45, %v1592_v28  ;;  %v1608_v59 = vpop.eup %1607  ;;  %v1575_v54 = vpack.i.bf16 %v1797_v17, %v1795_v16  ;;  %v1570_v48 = vpack.i.bf16 %v1789_v14, %v1787_v13 }
 0x423   :  { %1449 = vmatprep.subr.bf16.mxu0 %v1448_v55  ;;  %v505_v63 = vmul.f32 %v1608_v59, %v1911_v9 }
 0x424   :  { %1451 = vmatpush3.bf16.msra.mxu0 %v1448_v55 }
 0x425   :  { %1453 = vmatprep.subr.bf16.mxu0 %v1452_v56  ;;  %v1610_v61 = vpop.eup %1609 }
 0x426   :  { %v506_v62 = vmul.f32 %v1610_v61, %v1916_v31  ;;  %v1612_v7 = vpop.eup %1611  ;;  %v1155_v61 = vld [vmem:[#allocation5 + $0xc1] ss:$0 sm:$0xff] }
 0x427   :  { %v507_v8 = vmul.f32 %v1612_v7, %v1918_v32 }
 0x428   :  { %1455 = vmatpush3.bf16.msra.mxu0 %v1452_v56 }
 0x42b   :  { %1332 = vmatmul.mubr.msk.f32.vlgmr.msra.gmra.mrb[8].mxu0 %vm45_vm1, %v503_v51 }
 0x42c   :  { %1334 = vmatprep.mubr.msk.f32.mxu0 %vm45_vm1, %v504_v60 }
 0x433   :  { %1335 = vmatmul.mubr.msk.f32.gmra.mrb[8].mxu0 %vm45_vm1, %v505_v63 }
 0x434   :  { %1337 = vmatprep.mubr.msk.f32.mxu0 %vm45_vm1, %v506_v62 }
 0x43b   :  { %1338 = vmatmul.mubr.msk.f32.gmra.mrb[8].mxu0 %vm45_vm1, %v507_v8 }
 0x44f   :  { %v493_v58 = vpop.xlane.xlu0 %492  ;;  %v490_v12 = vpop.xlane.xlu1 %489 }
 0x450   :  { %1613 = vrcp.f32 %v493_v58 }
 0x451   :  { %1615 = vrcp.f32 %v490_v12 }
 0x453   :  { %v1547_v18 = vpop.permute.xlu1 %1546  ;;  %v1552_v21 = vpop.permute.xlu0 %1551 }
 0x454   :  { %v1549_v24 = vunpack.i.h.bf16 %v1547_v18  ;;  %v1548_v27 = vunpack.i.l.bf16 %v1547_v18  ;;  %v1554_v9 = vunpack.i.h.bf16 %v1552_v21  ;;  %v1553_v28 = vunpack.i.l.bf16 %v1552_v21  ;;  %v1156_v21 = vld [vmem:[#allocation5 + $0xc2] ss:$0 sm:$0xff] }
 0x456   :  { %v1456_v29 = vpack.c.bf16 %v1549_v24, %v1548_v27  ;;  %v1460_v30 = vpack.c.bf16 %v1554_v9, %v1553_v28 }
 0x458   :  { %1457 = vmatprep.subr.bf16.mxu1 %v1456_v29 }
 0x459   :  { %1459 = vmatpush3.bf16.msra.mxu1 %v1456_v29 }
 0x45a   :  { %v1614_v31 = vpop.eup %1613  ;;  %1461 = vmatprep.subr.bf16.mxu1 %v1460_v30 }
 0x45b   :  { %v1616_v33 = vpop.eup %1615  ;;  %v509_v32 = vmul.f32 %v1614_v31, %v1932_v42 }
 0x45c   :  { %v508_v36 = vmul.f32 %v1616_v33, %v1930_v41 }
 0x45d   :  { %1463 = vmatpush3.bf16.msra.mxu1 %v1460_v30 }
 0x45e   :  { %1340 = vmatprep.mubr.msk.f32.mxu0 %vm45_vm1, %v508_v36 }
 0x45f   :  { %1341 = vmatmul.mubr.msk.f32.gmra.mrb[8].mxu0 %vm45_vm1, %v509_v32 }
 0x532   :  { %v1342_v37 = vpop.f32.mrb[8].mxu0 }
 0x533   :  { %v654_v38 = vpop.f32.mrb[9].mxu0 }
 0x534   :  { %1351 = vmatprep.mubr.msk.f32.mxu1 %vm42_vm0, %v654_v38 }
 0x535   :  { %1352 = vmatmul.mubr.msk.f32.vlgmr.msra.gmra.mrb[8].mxu1 %vm42_vm0, %v1342_v37 }
 0x608   :  { %v1353_v40 = vpop.f32.mrb[8].mxu1 }
 0x609   :  { %v768_v43 = vadd.f32 %v1353_v40, %v1152_v39  ;;  %v762_v5 = vpop.f32.mrb[9].mxu1  ;;  %v1157_v40 = vld [vmem:[#allocation5 + $0xc3] ss:$0 sm:$0xff] }
 0x60a   :  { %v763_v15 = vadd.f32 %v1152_v39, %v762_v5 }
 0x60b   :  { %v774_v42 = vadd.f32 %v768_v43, %v1771_v6 }
 0x60c   :  { %v773_v41 = vadd.f32 %v763_v15, %v1757_v0  ;;  %v1555_v0 = vpack.i.bf16 %v1763_v2, %v1759_v1  ;;  %v1580_v1 = vpack.i.bf16 %v1803_v20, %v1801_v19 }
 0x60d   :  { %v778_v34 = vsel %vm42_vm0, %v774_v42, 0.0 }
 0x60e   :  { %779 = vadd.xlane.f32.xlu0 %v778_v34  ;;  %v775_v35 = vsel %vm42_vm0, %v773_v41, 0.0 }
 0x60f   :  { %776 = vadd.xlane.f32.xlu1 %v775_v35 }
 0x69b   :  { %v780_v44 = vpop.xlane.xlu0 %779 }
 0x69c   :  { %v783_v46 = vmul.f32 0.03125, %v780_v44  ;;  %v777_v47 = vpop.xlane.xlu1 %776 }
 0x69d   :  { %v782_v49 = vmul.f32 0.03125, %v777_v47 }
 0x69e   :  { %v785_v50 = vsub.f32 %v774_v42, %v783_v46 }
 0x69f   :  { %v784_v53 = vsub.f32 %v773_v41, %v782_v49 }
 0x6a0   :  { %v787_v52 = vmul.f32 %v785_v50, %v785_v50 }
 0x6a1   :  { %v786_v22 = vmul.f32 %v784_v53, %v784_v53 }
 0x6a2   :  { %v791_v23 = vsel %vm42_vm0, %v787_v52, 0.0 }
 0x6a3   :  { %792 = vadd.xlane.f32.xlu0 %v791_v23  ;;  %v788_v6 = vsel %vm42_vm0, %v786_v22, 0.0  ;;  %v1160_v22 = vld [vmem:[#allocation5 + $0xc4] ss:$0 sm:$0xff] }
 0x6a4   :  { %789 = vadd.xlane.f32.xlu1 %v788_v6 }
 0x6b5   :  { %1556 = vrot.lane.b32.xlu1 %v1555_v0, %s1709_s9 }
 0x6b9   :  { %1561 = vrot.lane.b32.xlu0 %v1560_v25, %s1709_s9  ;;  %1566 = vrot.lane.b32.xlu1 %v1565_v26, %s1709_s9 }
 0x6bd   :  { %1576 = vrot.lane.b32.xlu0 %v1575_v54, %s1709_s9  ;;  %1571 = vrot.lane.b32.xlu1 %v1570_v48, %s1709_s9 }
 0x6c1   :  { %1581 = vrot.lane.b32.xlu1 %v1580_v1, %s1709_s9 }
 0x730   :  { %v793_v2 = vpop.xlane.xlu0 %792 }
 0x731   :  { %v795_v3 = vmul.f32 0.03125, %v793_v2  ;;  %v790_v4 = vpop.xlane.xlu1 %789 }
 0x732   :  { %v794_v10 = vmul.f32 0.03125, %v790_v4 }
 0x733   :  { %v797_v11 = vadd.f32 1e-05, %v795_v3 }
 0x734   :  { %v796_v16 = vadd.f32 1e-05, %v794_v10  ;;  %v1562_v17 = vpop.permute.xlu0 %1561 }
 0x735   :  { %1617 = vrsqrt.f32 %v797_v11  ;;  %v1557_v55 = vpop.permute.xlu1 %1556  ;;  %v1564_v56 = vunpack.i.h.bf16 %v1562_v17  ;;  %v1563_v13 = vunpack.i.l.bf16 %v1562_v17 }
 0x736   :  { %1619 = vrsqrt.f32 %v796_v16  ;;  %v1559_v14 = vunpack.i.h.bf16 %v1557_v55  ;;  %v1558_v57 = vunpack.i.l.bf16 %v1557_v55 }
 0x737   :  { %v1468_v51 = vpack.c.bf16 %v1564_v56, %v1563_v13 }
 0x738   :  { %v1464_v45 = vpack.c.bf16 %v1559_v14, %v1558_v57  ;;  %v1577_v30 = vpop.permute.xlu0 %1576 }
 0x739   :  { %v1567_v19 = vpop.permute.xlu1 %1566  ;;  %v1579_v31 = vunpack.i.h.bf16 %v1577_v30  ;;  %v1578_v33 = vunpack.i.l.bf16 %v1577_v30 }
 0x73a   :  { %1465 = vmatprep.subr.bf16.mxu1 %v1464_v45  ;;  %v1569_v20 = vunpack.i.h.bf16 %v1567_v19  ;;  %v1568_v60 = vunpack.i.l.bf16 %v1567_v19 }
 0x73b   :  { %1467 = vmatpush3.bf16.msra.mxu1 %v1464_v45  ;;  %v1480_v32 = vpack.c.bf16 %v1579_v31, %v1578_v33 }
 0x73c   :  { %1469 = vmatprep.subr.bf16.mxu1 %v1468_v51  ;;  %v1472_v63 = vpack.c.bf16 %v1569_v20, %v1568_v60 }
 0x73d   :  { %v1572_v8 = vpop.permute.xlu1 %1571 }
 0x73e   :  { %1473 = vmatprep.subr.bf16.mxu0 %v1472_v63  ;;  %v1574_v12 = vunpack.i.h.bf16 %v1572_v8  ;;  %v1573_v18 = vunpack.i.l.bf16 %v1572_v8 }
 0x73f   :  { %v1618_v59 = vpop.eup %1617  ;;  %1471 = vmatpush3.bf16.msra.mxu1 %v1468_v51  ;;  %1475 = vmatpush3.bf16.msra.mxu0 %v1472_v63  ;;  %v1164_v63 = vld [vmem:[#allocation5 + $0xc6] ss:$0 sm:$0xff] }
 0x740   :  { %v1620_v62 = vpop.eup %1619  ;;  %v801_v7 = vmul.f32 %v1618_v59, %v785_v50  ;;  %v1476_v9 = vpack.c.bf16 %v1574_v12, %v1573_v18  ;;  %v1163_v59 = vld [vmem:[#allocation5 + $0xc5] ss:$0 sm:$0xff] }
 0x741   :  { %v800_v58 = vmul.f32 %v1620_v62, %v784_v53  ;;  %v1582_v36 = vpop.permute.xlu1 %1581 }
 0x742   :  { %v807_v24 = vmul.f32 %v1155_v61, %v801_v7  ;;  %1477 = vmatprep.subr.bf16.mxu0 %v1476_v9  ;;  %v1584_v37 = vunpack.i.h.bf16 %v1582_v36  ;;  %v1583_v38 = vunpack.i.l.bf16 %v1582_v36 }
 0x743   :  { %v806_v27 = vmul.f32 %v1155_v61, %v800_v58  ;;  %1479 = vmatpush3.bf16.msra.mxu0 %v1476_v9 }
 0x744   :  { %v813_v29 = vadd.f32 %v1156_v21, %v807_v24  ;;  %1481 = vmatprep.subr.bf16.mxu0 %v1480_v32  ;;  %v1484_v39 = vpack.c.bf16 %v1584_v37, %v1583_v38 }
 0x745   :  { %v812_v28 = vadd.f32 %v1156_v21, %v806_v27 }
 0x747   :  { %1362 = vmatprep.mubr.msk.f32.mxu1 %vm42_vm0, %v812_v28  ;;  %1483 = vmatpush3.bf16.msra.mxu0 %v1480_v32 }
 0x748   :  { %1363 = vmatmul.mubr.msk.f32.vlgmr.msra.gmra.mrb[10].mxu1 %vm42_vm0, %v813_v29  ;;  %1485 = vmatprep.subr.bf16.mxu0 %v1484_v39 }
 0x74b   :  { %1487 = vmatpush3.bf16.msra.mxu0 %v1484_v39 }
 0x81b   :  { %v1364_v43 = vpop.f32.mrb[10].mxu1 }
 0x81c   :  { %v917_v5 = vadd.f32 %v1364_v43, %v1157_v40  ;;  %v911_v15 = vpop.f32.mrb[11].mxu1 }
 0x81d   :  { %v912_v42 = vadd.f32 %v1157_v40, %v911_v15 }
 0x81e   :  { %v923_v41 = vmul.f32 0.70710677, %v917_v5  ;;  %v921_v50 = vmul.f32 0.5, %v917_v5 }
 0x81f   :  { %v922_v34 = vmul.f32 0.70710677, %v912_v42  ;;  %v920_v47 = vmul.f32 0.5, %v912_v42 }
 0x820   :  { %1621 = verf.f32 %v923_v41 }
 0x821   :  { %1623 = verf.f32 %v922_v34 }
 0x82a   :  { %v1622_v35 = vpop.eup %1621 }
 0x82b   :  { %v1624_v44 = vpop.eup %1623  ;;  %v927_v46 = vadd.f32 1.0, %v1622_v35 }
 0x82c   :  { %v926_v49 = vadd.f32 1.0, %v1624_v44 }
 0x82d   :  { %v929_v52 = vmul.f32 %v927_v46, %v921_v50 }
 0x82e   :  { %v928_v53 = vmul.f32 %v926_v49, %v920_v47 }
 0x830   :  { %1381 = vmatprep.mubr.msk.f32.mxu0 %vm45_vm1, %v928_v53 }
 0x831   :  { %1382 = vmatmul.mubr.msk.f32.vlgmr.msra.gmra.mrb[10].mxu0 %vm45_vm1, %v929_v52 }
 0x904   :  { %v1383_v23 = vpop.f32.mrb[10].mxu0 }
 0x905   :  { %v1053_v6 = vadd.f32 %v1383_v23, %v1160_v22  ;;  %v1047_v0 = vpop.f32.mrb[11].mxu0 }
 0x906   :  { %v1048_v25 = vadd.f32 %v1160_v22, %v1047_v0 }
 0x907   :  { %v1059_v26 = vadd.f32 %v1053_v6, %v813_v29 }
 0x908   :  { %v1058_v54 = vadd.f32 %v1048_v25, %v812_v28 }
 0x909   :  { %v1063_v48 = vsel %vm42_vm0, %v1059_v26, 0.0 }
 0x90a   :  { %1064 = vadd.xlane.f32.xlu1 %v1063_v48  ;;  %v1060_v1 = vsel %vm42_vm0, %v1058_v54, 0.0 }
 0x90b   :  { %1061 = vadd.xlane.f32.xlu0 %v1060_v1 }
 0x997   :  { %v1065_v2 = vpop.xlane.xlu1 %1064 }
 0x998   :  { %v1067_v3 = vmul.f32 0.03125, %v1065_v2  ;;  %v1062_v4 = vpop.xlane.xlu0 %1061 }
 0x999   :  { %v1066_v10 = vmul.f32 0.03125, %v1062_v4 }
 0x99a   :  { %v1069_v11 = vsub.f32 %v1059_v26, %v1067_v3 }
 0x99b   :  { %v1068_v16 = vsub.f32 %v1058_v54, %v1066_v10 }
 0x99c   :  { %v1071_v56 = vmul.f32 %v1069_v11, %v1069_v11 }
 0x99d   :  { %v1070_v17 = vmul.f32 %v1068_v16, %v1068_v16 }
 0x99e   :  { %v1075_v13 = vsel %vm42_vm0, %v1071_v56, 0.0 }
 0x99f   :  { %v1072_v55 = vsel %vm42_vm0, %v1070_v17, 0.0 }
 0x9a0   :  { %1073 = vadd.xlane.f32.xlu0 %v1072_v55 }
 0x9a4   :  { %1076 = vadd.xlane.f32.xlu0 %v1075_v13 }
 0xa2d   :  { %v1074_v14 = vpop.xlane.xlu0 %1073 }
 0xa2e   :  { %v1078_v57 = vmul.f32 0.03125, %v1074_v14 }
 0xa30   :  { %v1080_v45 = vadd.f32 1e-05, %v1078_v57 }
 0xa31   :  { %v1077_v51 = vpop.xlane.xlu0 %1076 }
 0xa32   :  { %1625 = vrsqrt.f32 %v1080_v45  ;;  %v1079_v19 = vmul.f32 0.03125, %v1077_v51 }
 0xa34   :  { %v1081_v20 = vadd.f32 1e-05, %v1079_v19 }
 0xa36   :  { %1627 = vrsqrt.f32 %v1081_v20 }
 0xa3c   :  { %v1626_v60 = vpop.eup %1625 }
 0xa3d   :  { %v1084_v61 = vmul.f32 %v1626_v60, %v1068_v16 }
 0xa3f   :  { %v1090_v62 = vmul.f32 %v1163_v59, %v1084_v61 }
 0xa40   :  { %v1628_v7 = vpop.eup %1627 }
 0xa41   :  { %v1085_v8 = vmul.f32 %v1628_v7, %v1069_v11  ;;  %v1096_v58 = vadd.f32 %v1164_v63, %v1090_v62 }
 0xa43   :  { %v1091_v12 = vmul.f32 %v1163_v59, %v1085_v8  ;;  %1098 = vst.msk [vmem:[#allocation7] sm:$0xff] %vm42_vm0, %v1096_v58 }
 0xa45   :  { %v1097_v18 = vadd.f32 %v1164_v63, %v1091_v12 }
 0xa47   :  { %1099 = vst.msk [vmem:[#allocation7 + $0x8] sm:$0xff] %vm42_vm0, %v1097_v18 }
 0xa48   :  { %1684 = shalt.err (!%p1681_p6)
}
 0xa49   :  { %s1685_s16 = scalar_lea.hbm %s2011_s2, 256 }
 0xa4a   :  { %p1686_p7 = scmp.ne.s32.totalorder %s2011_s2, %s1685_s16  ;;  %p1689_p8 = scmp.lt.u32.totalorder %s1685_s16, %s2011_s2 }
 0xa4c   :  { %p1691_p9 = pnand %p1689_p8, %p1686_p7 }
 0xa4e   :  { %1694 = shalt.err (!%p1691_p9)
}
 0xa4f   :  { %1111 = dma.vmem_to_hbm [thread:$0]  %s1106_s12, 256, %s2011_s2, [#allocation4], %s1702_s19, %s1702_s19, %s1703_s20  }
 0xa50   :  { %1699 = dma.done.wait [#allocation4], 256  }
 0xa51   :  { %1700 = vsyncadd [#allocation4], 4294967040 }
 0xa52   :  { %1115 = vsyncpa [#allocation3], 1 }
 0xa53   :  { %1116 = vsyncpa [#allocation6], 1 }
 0xa54   :  { %1117 = vsyncpa [#allocation4], 1 }

</bundles_post_ra>
